<compile_context>
chip_gen: v6e
topology: v6e:2x2x1
jax: 0.10.0
libtpu: 0.0.40
codegen_flags: <defaults>
</compile_context>

<pallas_src>
import functools

import jax
import jax.numpy as jnp
from jax import lax
from jax.experimental import pallas as pl
from jax.experimental.pallas import tpu as pltpu

# --- hyper-parameters from the module __init__ (no learnable weights) ---
FOCAL_WEIGHT = 0.5
DICE_WEIGHT = 0.5
CLASS_WEIGHT = 10.0
ALPHA = 0.8
GAMMA = 2.0          # == 2 exactly; exploited as a plain square below
SMOOTH = 1.0

LANE = 128           # lane width (last dim)
SUBLANE = 8          # f32 sublane count
CHUNK = 64           # rows per inner fori_loop chunk (keeps temps in vregs)
MAX_TM = 4096        # rows per grid step (2 MiB f32 per input block)
CORE_SPLIT = 2       # leading "parallel" grid axis (v7x megacore); inert on 1-TC chips
PAD_LOGIT = -1e4     # exp(-|PAD_LOGIT|) == 0 -> masked elements contribute exactly 0


def _combined_loss_kernel(n_ref, x_ref, t_ref, acc_ref, *, steps, tm, binary):
    c = pl.program_id(0)
    i = pl.program_id(1)
    n_total = n_ref[0]

    @pl.when(i == 0)
    def _():
        acc_ref[...] = jnp.zeros_like(acc_ref)

    # Logical (unclamped) flat-element offset of this block.  For clamped
    # duplicate blocks (index_map min'ed to the last real block) this is
    # >= n_total, so the whole block is masked to zero contribution.
    blk_start = (c * steps + i) * (tm * LANE)

    # Per-chunk local flat offsets, hoisted out of the loop (loop-invariant).
    local_off = (lax.broadcasted_iota(jnp.int32, (CHUNK, LANE), 0) * LANE
                 + lax.broadcasted_iota(jnp.int32, (CHUNK, LANE), 1))

    def fold(v):   # (CHUNK, LANE) -> (SUBLANE, LANE) via pure VPU vreg adds
        return jnp.sum(v.reshape(CHUNK // SUBLANE, SUBLANE, LANE), axis=0)

    def body(j, carry):
        f_acc, s_acc, st_acc, t_acc = carry
        r0 = pl.multiple_of(j * CHUNK, CHUNK)
        x = x_ref[pl.ds(r0, CHUNK), :].astype(jnp.float32)
        t = t_ref[pl.ds(r0, CHUNK), :].astype(jnp.float32)

        # Mask ragged tail / out-of-bounds block region (garbage data there).
        mask = (blk_start + r0 * LANE + local_off) < n_total
        x = jnp.where(mask, x, PAD_LOGIT)
        t = jnp.where(mask, t, 0.0)

        # sigmoid(x) from exp(-|x|) with approx EUP reciprocal + 1 Newton step.
        e = jnp.exp(-jnp.abs(x))
        d = 1.0 + e
        inv = pl.reciprocal(d, approx=True)
        inv = inv * (2.0 - d * inv)                # Newton refinement
        s = jnp.where(x >= 0.0, 1.0, e) * inv      # sigmoid(x)

        # binary_cross_entropy_with_logits (numerically stable form).
        bce = jnp.maximum(x, 0.0) - x * t + jnp.log1p(e)

        if binary:
            # pt = exp(-bce) == s^t (1-s)^(1-t); exact for t in {0, 1}.
            pt = jnp.where(t > 0.5, s, 1.0 - s)
        else:
            pt = jnp.exp(-bce)                     # general soft-label path
        omp = 1.0 - pt
        w = jnp.where(t > 0.5, CLASS_WEIGHT * ALPHA, ALPHA)  # folded constants
        focal = w * (omp * omp) * bce              # gamma == 2

        return (f_acc + fold(focal), s_acc + fold(s),
                st_acc + fold(s * t), t_acc + fold(t))

    zero = jnp.zeros((SUBLANE, LANE), jnp.float32)
    trips = tm // CHUNK
    f_acc, s_acc, st_acc, t_acc = lax.fori_loop(
        0, trips, body, (zero, zero, zero, zero), unroll=min(2, trips))

    acc_ref[0, 0] += f_acc
    acc_ref[0, 1] += s_acc
    acc_ref[0, 2] += st_acc
    acc_ref[0, 3] += t_acc


@functools.partial(
    jax.jit, static_argnames=("max_rows_per_tile", "assume_binary_targets"))
def combined_loss(inputs, targets, *, max_rows_per_tile=MAX_TM,
                  assume_binary_targets=True):
    """Equivalent of CombinedLoss()(inputs, targets) -> scalar f32.

    Set assume_binary_targets=False for soft labels (uses exp(-bce) for pt,
    matching the PyTorch reference exactly in that regime).
    """
    total = inputs.size
    x_flat = inputs.reshape(-1)     # free bitcast reshapes
    t_flat = targets.reshape(-1)

    rows = max(-(-total // LANE), CHUNK)
    padded = rows * LANE
    if padded != total:
        # Only hit when total isn't a multiple of 128 (or the tensor is tiny);
        # the kernel masks by the true element count, so pad values are inert.
        x_flat = jnp.pad(x_flat, (0, padded - total))
        t_flat = jnp.pad(t_flat, (0, padded - total))
    x2 = x_flat.reshape(rows, LANE)
    t2 = t_flat.reshape(rows, LANE)

    tm = min(max_rows_per_tile, rows)
    tm = max(CHUNK, (tm // CHUNK) * CHUNK)           # multiple of CHUNK, <= rows
    nblocks = -(-rows // tm)
    steps = -(-nblocks // CORE_SPLIT)

    # Clamp to the last real block; duplicates are fully masked in-kernel.
    in_map = lambda c, i, n: (jnp.minimum(c * steps + i, nblocks - 1), 0)

    kernel = functools.partial(_combined_loss_kernel, steps=steps, tm=tm,
                               binary=assume_binary_targets)

    partials = pl.pallas_call(
        kernel,
        out_shape=jax.ShapeDtypeStruct(
            (CORE_SPLIT, 4, SUBLANE, LANE), jnp.float32),
        grid_spec=pltpu.PrefetchScalarGridSpec(
            num_scalar_prefetch=1,                   # true element count (SMEM)
            grid=(CORE_SPLIT, steps),
            in_specs=[
                pl.BlockSpec((tm, LANE), in_map),
                pl.BlockSpec((tm, LANE), in_map),
            ],
            out_specs=pl.BlockSpec((1, 4, SUBLANE, LANE),
                                   lambda c, i, n: (c, 0, 0, 0)),
        ),
        compiler_params=pltpu.CompilerParams(
            dimension_semantics=("parallel", "arbitrary"),
            vmem_limit_bytes=48 * 1024 * 1024),
    )(jnp.array([total], jnp.int32), x2, t2)

    focal_sum = jnp.sum(partials[:, 0])
    sig_sum = jnp.sum(partials[:, 1])
    inter_sum = jnp.sum(partials[:, 2])
    tgt_sum = jnp.sum(partials[:, 3])

    n_elem = jnp.float32(total)
    focal = focal_sum / n_elem                       # reduction='mean'
    dice = (2.0 * inter_sum + SMOOTH) / (sig_sum + tgt_sum + SMOOTH)
    return FOCAL_WEIGHT * focal + DICE_WEIGHT * (1.0 - dice)


def _reference_loss(inputs, targets):
    """Pure-JAX reference mirroring the PyTorch module exactly."""
    x = inputs.astype(jnp.float32).reshape(-1)
    t = targets.astype(jnp.float32).reshape(-1)
    bce = jnp.maximum(x, 0.0) - x * t + jnp.log1p(jnp.exp(-jnp.abs(x)))
    pt = jnp.exp(-bce)
    w = jnp.where(t > 0.5, CLASS_WEIGHT, 1.0)
    focal = jnp.mean(w * ALPHA * (1.0 - pt) ** GAMMA * bce)
    s = jax.nn.sigmoid(x)
    dice = (2.0 * jnp.sum(s * t) + SMOOTH) / (jnp.sum(s) + jnp.sum(t) + SMOOTH)
    return FOCAL_WEIGHT * focal + DICE_WEIGHT * (1.0 - dice)


if __name__ == "__main__":
    key = jax.random.PRNGKey(0)
    k1, k2, k3, k4 = jax.random.split(key, 4)

    # segmentation-style logits / binary targets, NCHW: (batch=2, ch=4, 16, 16)
    x = jax.random.normal(k1, (2, 4, 16, 16), dtype=jnp.float32) * 2.0
    t = (jax.random.uniform(k2, (2, 4, 16, 16)) > 0.8).astype(jnp.float32)

    out = jax.block_until_ready(combined_loss(x, t))
    ref = _reference_loss(x, t)
    assert jnp.allclose(out, ref, rtol=1e-5, atol=1e-6), (out, ref)

    # ragged shape (1155 elems, not a multiple of 128) exercises in-kernel mask
    xr = jax.random.normal(k3, (3, 5, 7, 11), dtype=jnp.float32) * 2.0
    tr = (jax.random.uniform(k4, (3, 5, 7, 11)) > 0.8).astype(jnp.float32)
    out_r = jax.block_until_ready(combined_loss(xr, tr))
    ref_r = _reference_loss(xr, tr)
    assert jnp.allclose(out_r, ref_r, rtol=1e-5, atol=1e-6), (out_r, ref_r)

    print("KERNEL_OK")
</pallas_src>

<mosaic_0001>
module attributes {stable_mosaic.version = 11 : i64} {
  func.func @_combined_loss_kernel(%arg0: i32, %arg1: i32, %arg2: memref<1xi32, #tpu.memory_space<smem>>, %arg3: memref<64x128xf32, #tpu.memory_space<vmem>>, %arg4: memref<64x128xf32, #tpu.memory_space<vmem>>, %arg5: memref<1x4x8x128xf32, #tpu.memory_space<vmem>>) attributes {dimension_semantics = [#tpu.dimension_semantics<parallel>, #tpu.dimension_semantics<arbitrary>], iteration_bounds = array<i64: 2, 1>, scalar_prefetch = 1 : i64, scratch_operands = 0 : i64, tpu.core_type = #tpu.core_type<tc>, window_params = [{transform_indices = @transform_0, window_bounds = array<i64: 64, 128>}, {transform_indices = @transform_1, window_bounds = array<i64: 64, 128>}, {transform_indices = @transform_2, window_bounds = array<i64: 1, 4, 8, 128>}]} {
    %c0 = arith.constant 0 : index
    %0 = memref.load %arg2[%c0] : memref<1xi32, #tpu.memory_space<smem>>
    %c0_i32 = arith.constant 0 : i32
    %1 = arith.cmpi eq, %arg1, %c0_i32 : i32
    %2 = arith.extui %1 : i1 to i32
    %c0_i32_0 = arith.constant 0 : i32
    %3 = arith.cmpi ne, %2, %c0_i32_0 : i32
    scf.if %3 {
      %cst_53 = arith.constant 0.000000e+00 : f32
      %103 = vector.broadcast %cst_53 : f32 to vector<1x4x8x128xf32>
      %c0_54 = arith.constant 0 : index
      %c0_55 = arith.constant 0 : index
      %c0_56 = arith.constant 0 : index
      %c0_57 = arith.constant 0 : index
      %104 = vector.load %arg5[%c0_54, %c0_55, %c0_56, %c0_57] : memref<1x4x8x128xf32, #tpu.memory_space<vmem>>, vector<1x4x8x128xf32>
      tpu.vector_store %arg5[%c0_54, %c0_55, %c0_56, %c0_57], %103 {strides = array<i32>} : memref<1x4x8x128xf32, #tpu.memory_space<vmem>>, vector<1x4x8x128xf32>,
    } else {
    }
    %c1_i32 = arith.constant 1 : i32
    %4 = arith.muli %arg0, %c1_i32 : i32
    %5 = arith.addi %4, %arg1 : i32
    %c8192_i32 = arith.constant 8192 : i32
    %6 = arith.muli %5, %c8192_i32 : i32
    %7 = tpu.iota {dimensions = array<i32: 0>} : vector<64x128xi32>
    %c128_i32 = arith.constant 128 : i32
    %8 = vector.broadcast %c128_i32 : i32 to vector<64x128xi32>
    %9 = arith.muli %7, %8 : vector<64x128xi32>
    %10 = tpu.iota {dimensions = array<i32: 1>} : vector<64x128xi32>
    %11 = arith.addi %9, %10 : vector<64x128xi32>
    %cst = arith.constant 0.000000e+00 : f32
    %12 = vector.broadcast %cst : f32 to vector<8x128xf32>
    %c0_i32_1 = arith.constant 0 : i32
    %c64_i32 = arith.constant 64 : i32
    %13 = arith.muli %c0_i32_1, %c64_i32 : i32
    %14 = tpu.assume_multiple %13, 64 : i32
    %15 = arith.index_cast %14 : i32 to index
    %c0_2 = arith.constant 0 : index
    %16 = vector.load %arg3[%15, %c0_2] : memref<64x128xf32, #tpu.memory_space<vmem>>, vector<64x128xf32>
    %17 = arith.index_cast %14 : i32 to index
    %c0_3 = arith.constant 0 : index
    %18 = vector.load %arg4[%17, %c0_3] : memref<64x128xf32, #tpu.memory_space<vmem>>, vector<64x128xf32>
    %c128_i32_4 = arith.constant 128 : i32
    %19 = arith.muli %14, %c128_i32_4 : i32
    %20 = arith.addi %6, %19 : i32
    %21 = vector.broadcast %20 : i32 to vector<64x128xi32>
    %22 = arith.addi %21, %11 : vector<64x128xi32>
    %23 = vector.broadcast %0 : i32 to vector<64x128xi32>
    %24 = arith.cmpi slt, %22, %23 : vector<64x128xi32>
    %cst_5 = arith.constant -1.000000e+04 : f32
    %25 = vector.broadcast %cst_5 : f32 to vector<64x128xf32>
    %26 = arith.select %24, %16, %25 : vector<64x128xi1>, vector<64x128xf32>
    %cst_6 = arith.constant 0.000000e+00 : f32
    %27 = vector.broadcast %cst_6 : f32 to vector<64x128xf32>
    %28 = arith.select %24, %18, %27 : vector<64x128xi1>, vector<64x128xf32>
    %29 = math.absf %26 : vector<64x128xf32>
    %cst_7 = arith.constant 0.000000e+00 : f32
    %30 = vector.broadcast %cst_7 : f32 to vector<64x128xf32>
    %31 = arith.subf %30, %29 : vector<64x128xf32>
    %32 = math.exp %31 : vector<64x128xf32>
    %cst_8 = arith.constant 1.000000e+00 : f32
    %33 = vector.broadcast %cst_8 : f32 to vector<64x128xf32>
    %34 = arith.addf %33, %32 : vector<64x128xf32>
    %35 = tpu.reciprocal %34 {approx = true} : vector<64x128xf32> -> vector<64x128xf32>
    %36 = arith.mulf %34, %35 : vector<64x128xf32>
    %cst_9 = arith.constant 2.000000e+00 : f32
    %37 = vector.broadcast %cst_9 : f32 to vector<64x128xf32>
    %38 = arith.subf %37, %36 : vector<64x128xf32>
    %39 = arith.mulf %35, %38 : vector<64x128xf32>
    %cst_10 = arith.constant 0.000000e+00 : f32
    %40 = vector.broadcast %cst_10 : f32 to vector<64x128xf32>
    %41 = arith.cmpf oge, %26, %40 : vector<64x128xf32>
    %cst_11 = arith.constant 1.000000e+00 : f32
    %42 = vector.broadcast %cst_11 : f32 to vector<64x128xf32>
    %43 = arith.select %41, %42, %32 : vector<64x128xi1>, vector<64x128xf32>
    %44 = arith.mulf %43, %39 : vector<64x128xf32>
    %cst_12 = arith.constant 0.000000e+00 : f32
    %45 = vector.broadcast %cst_12 : f32 to vector<64x128xf32>
    %46 = arith.maximumf %26, %45 : vector<64x128xf32>
    %47 = arith.mulf %26, %28 : vector<64x128xf32>
    %48 = arith.subf %46, %47 : vector<64x128xf32>
    %49 = math.log1p %32 : vector<64x128xf32>
    %50 = arith.addf %48, %49 : vector<64x128xf32>
    %cst_13 = arith.constant 5.000000e-01 : f32
    %51 = vector.broadcast %cst_13 : f32 to vector<64x128xf32>
    %52 = arith.cmpf ogt, %28, %51 : vector<64x128xf32>
    %cst_14 = arith.constant 1.000000e+00 : f32
    %53 = vector.broadcast %cst_14 : f32 to vector<64x128xf32>
    %54 = arith.subf %53, %44 : vector<64x128xf32>
    %55 = arith.select %52, %44, %54 : vector<64x128xi1>, vector<64x128xf32>
    %cst_15 = arith.constant 1.000000e+00 : f32
    %56 = vector.broadcast %cst_15 : f32 to vector<64x128xf32>
    %57 = arith.subf %56, %55 : vector<64x128xf32>
    %cst_16 = arith.constant 5.000000e-01 : f32
    %58 = vector.broadcast %cst_16 : f32 to vector<64x128xf32>
    %59 = arith.cmpf ogt, %28, %58 : vector<64x128xf32>
    %cst_17 = arith.constant 8.000000e+00 : f32
    %cst_18 = arith.constant 8.000000e-01 : f32
    %60 = vector.broadcast %cst_17 : f32 to vector<64x128xf32>
    %61 = vector.broadcast %cst_18 : f32 to vector<64x128xf32>
    %62 = arith.select %59, %60, %61 : vector<64x128xi1>, vector<64x128xf32>
    %63 = arith.mulf %57, %57 : vector<64x128xf32>
    %64 = arith.mulf %62, %63 : vector<64x128xf32>
    %65 = arith.mulf %64, %50 : vector<64x128xf32>
    %66 = vector.shape_cast %65 : vector<64x128xf32> to vector<8x8x128xf32>
    %cst_19 = arith.constant dense<0.000000e+00> : vector<8x128xf32>
    %67 = vector.multi_reduction <add>, %66, %cst_19 [0] : vector<8x8x128xf32> to vector<8x128xf32>
    %68 = arith.addf %12, %67 : vector<8x128xf32>
    %69 = vector.shape_cast %44 : vector<64x128xf32> to vector<8x8x128xf32>
    %cst_20 = arith.constant dense<0.000000e+00> : vector<8x128xf32>
    %70 = vector.multi_reduction <add>, %69, %cst_20 [0] : vector<8x8x128xf32> to vector<8x128xf32>
    %71 = arith.addf %12, %70 : vector<8x128xf32>
    %72 = arith.mulf %44, %28 : vector<64x128xf32>
    %73 = vector.shape_cast %72 : vector<64x128xf32> to vector<8x8x128xf32>
    %cst_21 = arith.constant dense<0.000000e+00> : vector<8x128xf32>
    %74 = vector.multi_reduction <add>, %73, %cst_21 [0] : vector<8x8x128xf32> to vector<8x128xf32>
    %75 = arith.addf %12, %74 : vector<8x128xf32>
    %76 = vector.shape_cast %28 : vector<64x128xf32> to vector<8x8x128xf32>
    %cst_22 = arith.constant dense<0.000000e+00> : vector<8x128xf32>
    %77 = vector.multi_reduction <add>, %76, %cst_22 [0] : vector<8x8x128xf32> to vector<8x128xf32>
    %78 = arith.addf %12, %77 : vector<8x128xf32>
    %c1_i32_23 = arith.constant 1 : i32
    %c0_24 = arith.constant 0 : index
    %c0_25 = arith.constant 0 : index
    %c0_26 = arith.constant 0 : index
    %c0_27 = arith.constant 0 : index
    %79 = vector.load %arg5[%c0_24, %c0_25, %c0_26, %c0_27] : memref<1x4x8x128xf32, #tpu.memory_space<vmem>>, vector<1x1x8x128xf32>
    %80 = vector.shape_cast %79 : vector<1x1x8x128xf32> to vector<8x128xf32>
    %81 = arith.addf %80, %68 : vector<8x128xf32>
    %c0_28 = arith.constant 0 : index
    %c0_29 = arith.constant 0 : index
    %c0_30 = arith.constant 0 : index
    %c0_31 = arith.constant 0 : index
    %82 = vector.load %arg5[%c0_28, %c0_29, %c0_30, %c0_31] : memref<1x4x8x128xf32, #tpu.memory_space<vmem>>, vector<1x1x8x128xf32>
    %83 = vector.shape_cast %82 : vector<1x1x8x128xf32> to vector<8x128xf32>
    %84 = vector.shape_cast %81 : vector<8x128xf32> to vector<1x1x8x128xf32>
    tpu.vector_store %arg5[%c0_28, %c0_29, %c0_30, %c0_31], %84 {strides = array<i32>} : memref<1x4x8x128xf32, #tpu.memory_space<vmem>>, vector<1x1x8x128xf32>,
    %c0_32 = arith.constant 0 : index
    %c1 = arith.constant 1 : index
    %c0_33 = arith.constant 0 : index
    %c0_34 = arith.constant 0 : index
    %85 = vector.load %arg5[%c0_32, %c1, %c0_33, %c0_34] : memref<1x4x8x128xf32, #tpu.memory_space<vmem>>, vector<1x1x8x128xf32>
    %86 = vector.shape_cast %85 : vector<1x1x8x128xf32> to vector<8x128xf32>
    %87 = arith.addf %86, %71 : vector<8x128xf32>
    %c0_35 = arith.constant 0 : index
    %c1_36 = arith.constant 1 : index
    %c0_37 = arith.constant 0 : index
    %c0_38 = arith.constant 0 : index
    %88 = vector.load %arg5[%c0_35, %c1_36, %c0_37, %c0_38] : memref<1x4x8x128xf32, #tpu.memory_space<vmem>>, vector<1x1x8x128xf32>
    %89 = vector.shape_cast %88 : vector<1x1x8x128xf32> to vector<8x128xf32>
    %90 = vector.shape_cast %87 : vector<8x128xf32> to vector<1x1x8x128xf32>
    tpu.vector_store %arg5[%c0_35, %c1_36, %c0_37, %c0_38], %90 {strides = array<i32>} : memref<1x4x8x128xf32, #tpu.memory_space<vmem>>, vector<1x1x8x128xf32>,
    %c0_39 = arith.constant 0 : index
    %c2 = arith.constant 2 : index
    %c0_40 = arith.constant 0 : index
    %c0_41 = arith.constant 0 : index
    %91 = vector.load %arg5[%c0_39, %c2, %c0_40, %c0_41] : memref<1x4x8x128xf32, #tpu.memory_space<vmem>>, vector<1x1x8x128xf32>
    %92 = vector.shape_cast %91 : vector<1x1x8x128xf32> to vector<8x128xf32>
    %93 = arith.addf %92, %75 : vector<8x128xf32>
    %c0_42 = arith.constant 0 : index
    %c2_43 = arith.constant 2 : index
    %c0_44 = arith.constant 0 : index
    %c0_45 = arith.constant 0 : index
    %94 = vector.load %arg5[%c0_42, %c2_43, %c0_44, %c0_45] : memref<1x4x8x128xf32, #tpu.memory_space<vmem>>, vector<1x1x8x128xf32>
    %95 = vector.shape_cast %94 : vector<1x1x8x128xf32> to vector<8x128xf32>
    %96 = vector.shape_cast %93 : vector<8x128xf32> to vector<1x1x8x128xf32>
    tpu.vector_store %arg5[%c0_42, %c2_43, %c0_44, %c0_45], %96 {strides = array<i32>} : memref<1x4x8x128xf32, #tpu.memory_space<vmem>>, vector<1x1x8x128xf32>,
    %c0_46 = arith.constant 0 : index
    %c3 = arith.constant 3 : index
    %c0_47 = arith.constant 0 : index
    %c0_48 = arith.constant 0 : index
    %97 = vector.load %arg5[%c0_46, %c3, %c0_47, %c0_48] : memref<1x4x8x128xf32, #tpu.memory_space<vmem>>, vector<1x1x8x128xf32>
    %98 = vector.shape_cast %97 : vector<1x1x8x128xf32> to vector<8x128xf32>
    %99 = arith.addf %98, %78 : vector<8x128xf32>
    %c0_49 = arith.constant 0 : index
    %c3_50 = arith.constant 3 : index
    %c0_51 = arith.constant 0 : index
    %c0_52 = arith.constant 0 : index
    %100 = vector.load %arg5[%c0_49, %c3_50, %c0_51, %c0_52] : memref<1x4x8x128xf32, #tpu.memory_space<vmem>>, vector<1x1x8x128xf32>
    %101 = vector.shape_cast %100 : vector<1x1x8x128xf32> to vector<8x128xf32>
    %102 = vector.shape_cast %99 : vector<8x128xf32> to vector<1x1x8x128xf32>
    tpu.vector_store %arg5[%c0_49, %c3_50, %c0_51, %c0_52], %102 {strides = array<i32>} : memref<1x4x8x128xf32, #tpu.memory_space<vmem>>, vector<1x1x8x128xf32>,
    return
  }
  func.func @transform_0(%arg0: i32, %arg1: i32, %arg2: memref<1xi32, #tpu.memory_space<smem>>) -> (i32, i32) {
    %c1_i32 = arith.constant 1 : i32
    %0 = arith.muli %arg0, %c1_i32 : i32
    %1 = arith.addi %0, %arg1 : i32
    %c0_i32 = arith.constant 0 : i32
    %2 = arith.minsi %1, %c0_i32 : i32
    %c0_i32_0 = arith.constant 0 : i32
    %c0_i32_1 = arith.constant 0 : i32
    return %2, %c0_i32_0 : i32, i32
  }
  func.func @transform_1(%arg0: i32, %arg1: i32, %arg2: memref<1xi32, #tpu.memory_space<smem>>) -> (i32, i32) {
    %c1_i32 = arith.constant 1 : i32
    %0 = arith.muli %arg0, %c1_i32 : i32
    %1 = arith.addi %0, %arg1 : i32
    %c0_i32 = arith.constant 0 : i32
    %2 = arith.minsi %1, %c0_i32 : i32
    %c0_i32_0 = arith.constant 0 : i32
    %c0_i32_1 = arith.constant 0 : i32
    return %2, %c0_i32_0 : i32, i32
  }
  func.func @transform_2(%arg0: i32, %arg1: i32, %arg2: memref<1xi32, #tpu.memory_space<smem>>) -> (i32, i32, i32, i32) {
    %c0_i32 = arith.constant 0 : i32
    %c0_i32_0 = arith.constant 0 : i32
    %c0_i32_1 = arith.constant 0 : i32
    %c0_i32_2 = arith.constant 0 : i32
    return %arg0, %c0_i32, %c0_i32_0, %c0_i32_1 : i32, i32, i32, i32
  }
}

</mosaic_0001>

<bundles_post_ra>
// kernel: combined_loss.1
= control target key start
LH: loop header
LB: loop body
LE: loop exit
PB: predicated region body
PF: predicated region fallthrough
CT: control target
= control target key end

     0   :  { %s851_s14 = smov 0   ;;  %s853_s15 = smov 0   ;;  %s1428_s0 = inlined_call_operand.<no memory space> [shape: s32[1], index: 0, kind: input, shape index: {}]   ;;  %s1429_s1 = inlined_call_operand.vmem [shape: f32[64,128], index: 1, kind: input, shape index: {}]   ;;  %s1430_s2 = inlined_call_operand.vmem [shape: f32[64,128], index: 2, kind: input, shape index: {}]   ;;  %s1431_s3 = inlined_call_operand.vmem [shape: f32[2,4,8,128], index: 3, kind: output, shape index: {}]  }
   0x1   :  { %8 = sst [smem:[#allocation3]] %s1428_s0  ;;  %s855_s16 = smov 0  }
   0x2 LB: > { %s26_s0 = sadd.s32 1, %s821_s15  ;;  %p712_p0 = scmp.ge.s32.totalorder %s825_s16, 1  ;;  %s825_s16 = sphi %s855_s16, %s14_s16   ;;  %s821_s15 = sphi %s853_s15, %s1499_s15   ;;  %s817_s14 = sphi %s851_s14, %s1498_s14  }
   0x3   : > { %p28_p1 = scmp.ge.s32.totalorder %s26_s0, 2  ;;  %p162_p2 = scmp.lt.s32.totalorder %s825_s16, 3 }
   0x5   : > { %s1501_s0 = smov (%p28_p1, %s26_s0), 0  ;;  %p163_p3 = pnand %p712_p0, %p162_p2 }
   0x7   : > { %166 = sbr.rel (%p163_p3) target bundleno = 112 (0x70), region = 28 }
   0xc   : > { %p196_p4 = scmp.lt.s32.totalorder %s817_s14, 0  ;;  %v235_v0 = vlaneseq  ;;  %s224_s17 = sld [smem:[#allocation3]] }
   0xd   : > { %s719_s18 = sshll.u32 %s817_s14, 13  ;;  %p219_p6 = scmp.lt.s32.totalorder %s817_s14, 1 }
   0xe   : > { %v236_v1 = vshrl.u32 %v235_v0, 7  ;;  %s197_s19 = scalar_select %p196_p4, %s817_s14, 0  ;;  %v253_v2 = vand.u32 127, %v235_v0  ;;  %v280_v13 = vstv %s719_s18 }
   0xf   : > { %s1505_s14 = smov (!%p219_p6, %s817_s14), 1 }
  0x10   : > { %v237_v3 = vadd.s32 8, %v236_v1  ;;  %v238_v4 = vadd.s32 16, %v236_v1  ;;  %v239_v5 = vadd.s32 24, %v236_v1  ;;  %v240_v6 = vadd.s32 32, %v236_v1  ;;  %s713_s20 = sshll.u32 %s197_s19, 3  ;;  %s728_s28 = sshll.u32 %s1505_s14, 5 }
  0x11   : > { %v241_v7 = vadd.s32 40, %v236_v1  ;;  %v242_v8 = vadd.s32 48, %v236_v1  ;;  %v243_v9 = vadd.s32 56, %v236_v1  ;;  %v244_v10 = vmul.u32 128, %v236_v1  ;;  %p199_p5 = scmp.lt.s32.totalorder %s713_s20, 7  ;;  %s223_s4 = scalar_lea.vmem %s1431_s3, %s728_s28 }
  0x12   : > { %v245_v11 = vmul.u32 128, %v237_v3  ;;  %v246_v12 = vmul.u32 128, %v238_v4  ;;  %v874_v17 = vstv %s224_s17 }
  0x13   : > { %v247_v14 = vmul.u32 128, %v239_v5  ;;  %v248_v15 = vmul.u32 128, %v240_v6  ;;  %v254_v16 = vadd.s32 %v253_v2, %v244_v10  ;;  %s1503_s20 = smov (!%p199_p5, %s713_s20), 7 }
  0x14   : > { %v249_v18 = vmul.u32 128, %v241_v7  ;;  %v250_v19 = vmul.u32 128, %v242_v8  ;;  %v255_v20 = vadd.s32 %v253_v2, %v245_v11  ;;  %v256_v21 = vadd.s32 %v253_v2, %v246_v12  ;;  %s714_s21 = sshll.u32 %s1503_s20, 3 }
  0x15   : > { %v251_v22 = vmul.u32 128, %v243_v9  ;;  %v257_v23 = vadd.s32 %v253_v2, %v247_v14  ;;  %v258_v24 = vadd.s32 %v253_v2, %v248_v15  ;;  %v878_v25 = vadd.s32 %v280_v13, %v254_v16  ;;  %s202_s24 = scalar_lea.vmem %s1429_s1, %s714_s21  ;;  %s214_s27 = scalar_lea.vmem %s1430_s2, %s714_s21 }
  0x16   : > { %v259_v26 = vadd.s32 %v253_v2, %v249_v18  ;;  %v260_v27 = vadd.s32 %v253_v2, %v250_v19  ;;  %v881_v28 = vadd.s32 %v280_v13, %v255_v20  ;;  %v883_v29 = vadd.s32 %v280_v13, %v256_v21  ;;  %v262_v33 = vld [vmem:[%s202_s24] sm:$0xff]  ;;  %v263_v36 = vld [vmem:[%s202_s24 + $0x8] sm:$0xff]  ;;  %v264_v37 = vld [vmem:[%s202_s24 + $0x10] sm:$0xff] }
  0x17   : > { %v261_v30 = vadd.s32 %v253_v2, %v251_v22  ;;  %v890_v31 = vadd.s32 %v280_v13, %v257_v23  ;;  %v892_v32 = vadd.s32 %v280_v13, %v258_v24  ;;  %vm290_vm0 = vcmp.lt.s32.totalorder %v878_v25, %v874_v17  ;;  %v265_v38 = vld [vmem:[%s202_s24 + $0x18] sm:$0xff]  ;;  %v266_v40 = vld [vmem:[%s202_s24 + $0x20] sm:$0xff]  ;;  %v267_v41 = vld [vmem:[%s202_s24 + $0x28] sm:$0xff] }
  0x18   : > { %v894_v34 = vadd.s32 %v280_v13, %v259_v26  ;;  %v896_v35 = vadd.s32 %v280_v13, %v260_v27  ;;  %vm291_vm1 = vcmp.lt.s32.totalorder %v881_v28, %v874_v17  ;;  %vm292_vm2 = vcmp.lt.s32.totalorder %v883_v29, %v874_v17  ;;  %v268_v42 = vld [vmem:[%s202_s24 + $0x30] sm:$0xff]  ;;  %v269_v43 = vld [vmem:[%s202_s24 + $0x38] sm:$0xff]  ;;  %v270_v9 = vld [vmem:[%s214_s27] sm:$0xff] }
  0x19   : > { %v900_v39 = vadd.s32 %v280_v13, %v261_v30  ;;  %vm293_vm3 = vcmp.lt.s32.totalorder %v890_v31, %v874_v17  ;;  %vm294_vm4 = vcmp.lt.s32.totalorder %v892_v32, %v874_v17  ;;  %v919_v44 = vsel %vm290_vm0, %v262_v33, -10000.0  ;;  %v271_v10 = vld [vmem:[%s214_s27 + $0x8] sm:$0xff]  ;;  %v272_v11 = vld [vmem:[%s214_s27 + $0x10] sm:$0xff]  ;;  %v273_v13 = vld [vmem:[%s214_s27 + $0x18] sm:$0xff] }
  0x1a   : > { %vm295_vm5 = vcmp.lt.s32.totalorder %v894_v34, %v874_v17  ;;  %vm296_vm6 = vcmp.lt.s32.totalorder %v896_v35, %v874_v17  ;;  %v924_v45 = vsel %vm291_vm1, %v263_v36, -10000.0  ;;  %v929_v46 = vsel %vm292_vm2, %v264_v37, -10000.0  ;;  %v274_v14 = vld [vmem:[%s214_s27 + $0x20] sm:$0xff]  ;;  %v275_v15 = vld [vmem:[%s214_s27 + $0x28] sm:$0xff]  ;;  %v276_v18 = vld [vmem:[%s214_s27 + $0x30] sm:$0xff] }
  0x1b   : > { %vm297_vm7 = vcmp.lt.s32.totalorder %v900_v39, %v874_v17  ;;  %v934_v47 = vsel %vm293_vm3, %v265_v38, -10000.0  ;;  %v939_v48 = vsel %vm294_vm4, %v266_v40, -10000.0  ;;  %v944_v49 = vsel %vm295_vm5, %v267_v41, -10000.0  ;;  %v277_v19 = vld [vmem:[%s214_s27 + $0x38] sm:$0xff] }
  0x1c   : > { %v949_v50 = vsel %vm296_vm6, %v268_v42, -10000.0  ;;  %v954_v51 = vsel %vm297_vm7, %v269_v43, -10000.0  ;;  %v314_v52 = vand.u32 2147483647, %v919_v44  ;;  %v315_v53 = vand.u32 2147483647, %v924_v45 }
  0x1d   : > { %v316_v54 = vand.u32 2147483647, %v929_v46  ;;  %v317_v55 = vand.u32 2147483647, %v934_v47  ;;  %v318_v56 = vand.u32 2147483647, %v939_v48 }
  0x1e   : > { %v319_v57 = vand.u32 2147483647, %v944_v49  ;;  %v320_v58 = vand.u32 2147483647, %v949_v50  ;;  %v321_v59 = vand.u32 2147483647, %v954_v51 }
  0x1f   : > { %v322_v60 = vsub.f32 0.0, %v314_v52  ;;  %v323_v61 = vsub.f32 0.0, %v315_v53  ;;  %v324_v62 = vsub.f32 0.0, %v316_v54  ;;  %v325_v63 = vsub.f32 0.0, %v317_v55 }
  0x20   : > { %v326_v0 = vsub.f32 0.0, %v318_v56  ;;  %v327_v1 = vsub.f32 0.0, %v319_v57  ;;  %v328_v2 = vsub.f32 0.0, %v320_v58  ;;  %v329_v5 = vsub.f32 0.0, %v321_v59 }
  0x21   : > { %v330_v3 = vmul.f32 1.442695, %v322_v60  ;;  %v332_v4 = vmul.f32 1.442695, %v323_v61  ;;  %v334_v6 = vmul.f32 1.442695, %v324_v62 }
  0x22   : > { %v336_v7 = vmul.f32 1.442695, %v325_v63  ;;  %v338_v8 = vmul.f32 1.442695, %v326_v0  ;;  %v340_v12 = vmul.f32 1.442695, %v327_v1 }
  0x23   : > { %755 = vpow2.f32 %v330_v3  ;;  %v342_v16 = vmul.f32 1.442695, %v328_v2  ;;  %v344_v20 = vmul.f32 1.442695, %v329_v5  ;;  %v972_v21 = vsel %vm290_vm0, %v270_v9, 0.0 }
  0x24   : > { %757 = vpow2.f32 %v332_v4  ;;  %1443 = vst [vmem:[#allocation4_spill] sm:$0xff] %v972_v21  ;;  %v977_v22 = vsel %vm291_vm1, %v271_v10, 0.0  ;;  %v982_v23 = vsel %vm292_vm2, %v272_v11, 0.0  ;;  %v987_v24 = vsel %vm293_vm3, %v273_v13, 0.0 }
  0x25   : > { %759 = vpow2.f32 %v334_v6  ;;  %1444 = vst [vmem:[#allocation5_spill] sm:$0xff] %v977_v22  ;;  %v992_v25 = vsel %vm294_vm4, %v274_v14, 0.0  ;;  %v997_v26 = vsel %vm295_vm5, %v275_v15, 0.0  ;;  %v1002_v27 = vsel %vm296_vm6, %v276_v18, 0.0 }
  0x26   : > { %761 = vpow2.f32 %v336_v7  ;;  %1445 = vst [vmem:[#allocation6_spill] sm:$0xff] %v992_v25  ;;  %1446 = vst [vmem:[#allocation7_spill] sm:$0xff] %v997_v26  ;;  %v1007_v28 = vsel %vm297_vm7, %v277_v19, 0.0  ;;  %v418_v29 = vmul.f32 %v972_v21, %v919_v44  ;;  %v410_v30 = vmax.f32 %v919_v44, 0.0 }
  0x27   : > { %763 = vpow2.f32 %v338_v8  ;;  %1447 = vst [vmem:[#allocation8_spill] sm:$0xff] %v1002_v27  ;;  %v419_v31 = vmul.f32 %v977_v22, %v924_v45  ;;  %v420_v32 = vmul.f32 %v982_v23, %v929_v46  ;;  %v411_v33 = vmax.f32 %v924_v45, 0.0 }
  0x28   : > { %765 = vpow2.f32 %v340_v12  ;;  %v412_v34 = vmax.f32 %v929_v46, 0.0  ;;  %v413_v17 = vmax.f32 %v934_v47, 0.0  ;;  %v414_v35 = vmax.f32 %v939_v48, 0.0 }
  0x29   : > { %767 = vpow2.f32 %v342_v16  ;;  %v415_v36 = vmax.f32 %v944_v49, 0.0  ;;  %v416_v37 = vmax.f32 %v949_v50, 0.0  ;;  %v421_v38 = vmul.f32 %v987_v24, %v934_v47 }
  0x2a   : > { %769 = vpow2.f32 %v344_v20  ;;  %v422_v39 = vmul.f32 %v992_v25, %v939_v48  ;;  %v417_v40 = vmax.f32 %v954_v51, 0.0  ;;  %v423_v41 = vmul.f32 %v997_v26, %v944_v49 }
  0x2b   : > { %v424_v42 = vmul.f32 %v1002_v27, %v949_v50  ;;  %v425_v43 = vmul.f32 %v1007_v28, %v954_v51  ;;  %vm386_vm8 = vcmp.ge.f32.partialorder %v919_v44, 0.0  ;;  %v1034_v52 = vsub.f32 %v410_v30, %v418_v29 }
  0x2c   : > { %vm387_vm9 = vcmp.ge.f32.partialorder %v924_v45, 0.0  ;;  %v1039_v54 = vsub.f32 %v411_v33, %v419_v31  ;;  %v1041_v55 = vsub.f32 %v412_v34, %v420_v32  ;;  %v1043_v56 = vsub.f32 %v413_v17, %v421_v38 }
  0x2d   : > { %v1045_v57 = vsub.f32 %v414_v35, %v422_v39  ;;  %vm388_vm10 = vcmp.ge.f32.partialorder %v929_v46, 0.0  ;;  %v1053_v60 = vsub.f32 %v415_v36, %v423_v41  ;;  %v1055_v61 = vsub.f32 %v416_v37, %v424_v42 }
  0x2e   : > { %1448 = vst [vmem:[#allocation9_spill] sm:$0xff] %v1041_v55  ;;  %1449 = vst [vmem:[#allocation10_spill] sm:$0xff] %v1043_v56  ;;  %v1057_v62 = vsub.f32 %v417_v40, %v425_v43  ;;  %vm389_vm11 = vcmp.ge.f32.partialorder %v934_v47, 0.0  ;;  %vm390_vm12 = vcmp.ge.f32.partialorder %v939_v48, 0.0  ;;  %vm514_vm13 = vcmp.gt.f32.partialorder %v972_v21, 0.5 }
  0x2f   : > { %1450 = vst [vmem:[#allocation11_spill] sm:$0xff] %v1045_v57  ;;  %1451 = vst [vmem:[#allocation12_spill] sm:$0xff] %v1053_v60  ;;  %vm515_vm14 = vcmp.gt.f32.partialorder %v977_v22, 0.5  ;;  %vm516_vm15 = vcmp.gt.f32.partialorder %v982_v23, 0.5  ;;  %vm391_vm0 = vcmp.ge.f32.partialorder %v944_v49, 0.0  ;;  %vm517_vm1 = vcmp.gt.f32.partialorder %v987_v24, 0.5 }
  0x30   : > { %v1036_v53 = vpop.eup %755  ;;  %1452 = vst [vmem:[#allocation13_spill] sm:$0xff] %v1055_v61  ;;  %1453 = vst [vmem:[#allocation14_spill] sm:$0xff] %v1057_v62  ;;  %vm518_vm2 = vcmp.gt.f32.partialorder %v992_v25, 0.5  ;;  %vm392_vm3 = vcmp.ge.f32.partialorder %v949_v50, 0.0  ;;  %vm519_vm4 = vcmp.gt.f32.partialorder %v997_v26, 0.5  ;;  %vm520_vm5 = vcmp.gt.f32.partialorder %v1002_v27, 0.5 }
  0x31   : > { %v1047_v58 = vpop.eup %757  ;;  %v1050_v59 = vadd.f32 1.0, %v1036_v53  ;;  %vm393_vm6 = vcmp.ge.f32.partialorder %v954_v51, 0.0  ;;  %v437_v7 = vmul.f32 -0.5, %v1036_v53  ;;  %v1432_v8 = vmov 0.8  }
  0x32   : > { %v1059_v63 = vpop.eup %759  ;;  %v1062_v0 = vadd.f32 1.0, %v1047_v58  ;;  %v1098_v9 = vsel %vm514_vm13, 8.0, %v1432_v8  ;;  %v1109_v12 = vsel %vm515_vm14, 8.0, %v1432_v8  ;;  %v1114_v13 = vsel %vm516_vm15, 8.0, %v1432_v8 }
  0x33   : > { %v1069_v1 = vpop.eup %761  ;;  %v1072_v2 = vadd.f32 1.0, %v1059_v63  ;;  %771 = vrcp.f32 %v1050_v59  ;;  %1454 = vst [vmem:[#allocation15_spill] sm:$0xff] %v1098_v9  ;;  %1455 = vst [vmem:[#allocation16_spill] sm:$0xff] %v1109_v12  ;;  %v1125_v16 = vsel %vm517_vm1, 8.0, %v1432_v8  ;;  %v1130_v18 = vsel %vm518_vm2, 8.0, %v1432_v8 }
  0x34   : > { %v1078_v3 = vpop.eup %763  ;;  %v1081_v4 = vadd.f32 1.0, %v1069_v1  ;;  %773 = vrcp.f32 %v1062_v0  ;;  %1456 = vst [vmem:[#allocation17_spill] sm:$0xff] %v1114_v13  ;;  %1457 = vst [vmem:[#allocation18_spill] sm:$0xff] %v1125_v16  ;;  %v446_v20 = vmul.f32 -0.5, %v1047_v58  ;;  %v1140_v29 = vsel %vm519_vm4, 8.0, %v1432_v8 }
  0x35   : > { %v1087_v5 = vpop.eup %765  ;;  %v1090_v6 = vadd.f32 1.0, %v1078_v3  ;;  %775 = vrcp.f32 %v1072_v2  ;;  %1458 = vst [vmem:[#allocation19_spill] sm:$0xff] %v1130_v18  ;;  %1459 = vst [vmem:[#allocation20_spill] sm:$0xff] %v1140_v29  ;;  %v438_v30 = vadd.f32 1.0, %v437_v7  ;;  %v1146_v31 = vsel %vm520_vm5, 8.0, %v1432_v8 }
  0x36   : > { %v1100_v10 = vpop.eup %767  ;;  %v1103_v11 = vadd.f32 1.0, %v1087_v5  ;;  %777 = vrcp.f32 %v1081_v4  ;;  %1460 = vst [vmem:[#allocation21_spill] sm:$0xff] %v1146_v31  ;;  %v1150_v32 = vadd.f32 %v977_v22, %v972_v21  ;;  %v1156_v33 = vsel %vm386_vm8, 1.0, %v1036_v53 }
  0x37   : > { %v1116_v14 = vpop.eup %769  ;;  %v1119_v15 = vadd.f32 1.0, %v1100_v10  ;;  %779 = vrcp.f32 %v1090_v6  ;;  %v440_v34 = vand.u32 2147483647, %v1036_v53  ;;  %v455_v17 = vmul.f32 -0.5, %v1059_v63 }
  0x38   : > { %v1133_v19 = vadd.f32 1.0, %v1116_v14  ;;  %781 = vrcp.f32 %v1103_v11  ;;  %v1163_v35 = vsel %vm387_vm9, 1.0, %v1047_v58  ;;  %v464_v36 = vmul.f32 -0.5, %v1069_v1 }
  0x39   : > { %783 = vrcp.f32 %v1119_v15  ;;  %v473_v37 = vmul.f32 -0.5, %v1078_v3  ;;  %v1171_v44 = vsel %vm388_vm10, 1.0, %v1059_v63  ;;  %v447_v38 = vadd.f32 1.0, %v446_v20 }
  0x3a   : > { %785 = vrcp.f32 %v1133_v19  ;;  %v449_v39 = vand.u32 2147483647, %v1047_v58  ;;  %v1178_v45 = vsel %vm389_vm11, 1.0, %v1069_v1  ;;  %v1183_v40 = vsel %vm390_vm12, 1.0, %v1078_v3 }
  0x3b   : > { %787 = vlog2.f32 %v1050_v59  ;;  %v1186_v41 = vmul.f32 %v1036_v53, %v438_v30  ;;  %v1192_v46 = vsel %vm391_vm0, 1.0, %v1087_v5  ;;  %v456_v42 = vadd.f32 1.0, %v455_v17 }
  0x3c   : > { %789 = vlog2.f32 %v1062_v0  ;;  %v482_v47 = vmul.f32 -0.5, %v1087_v5  ;;  %v1199_v48 = vsel %vm392_vm3, 1.0, %v1100_v10  ;;  %v465_v43 = vadd.f32 1.0, %v464_v36  ;;  %v1493_v29 = vld [vmem:[#allocation20_spill] sm:$0xff] }
  0x3d   : > { %791 = vlog2.f32 %v1072_v2  ;;  %v474_v53 = vadd.f32 1.0, %v473_v37  ;;  %v1205_v49 = vsel %vm393_vm6, 1.0, %v1116_v14  ;;  %v1208_v20 = vmul.f32 %v1047_v58, %v447_v38 }
  0x3e   : > { %793 = vlog2.f32 %v1081_v4  ;;  %v458_v30 = vand.u32 2147483647, %v1059_v63  ;;  %v467_v36 = vand.u32 2147483647, %v1069_v1  ;;  %v476_v37 = vand.u32 2147483647, %v1078_v3 }
  0x3f   : > { %795 = vlog2.f32 %v1090_v6  ;;  %v491_v8 = vmul.f32 -0.5, %v1100_v10  ;;  %vm1217_vm7 = vcmp.lt.f32.partialorder %v440_v34, 0.0004427343  ;;  %v1222_v58 = vmul.f32 %v1059_v63, %v456_v42 }
  0x40   : > { %v772_v7 = vpop.eup %771  ;;  %797 = vlog2.f32 %v1103_v11  ;;  %v483_v38 = vadd.f32 1.0, %v482_v47  ;;  %vm1226_vm8 = vcmp.lt.f32.partialorder %v449_v39, 0.0004427343  ;;  %v1231_v18 = vmul.f32 %v1069_v1, %v465_v43 }
  0x41   : > { %v774_v50 = vpop.eup %773  ;;  %v362_v17 = vmul.f32 %v772_v7, %v1050_v59  ;;  %799 = vlog2.f32 %v1119_v15  ;;  %v500_v34 = vmul.f32 -0.5, %v1116_v14  ;;  %vm1238_vm9 = vcmp.lt.f32.partialorder %v458_v30, 0.0004427343 }
  0x42   : > { %v776_v62 = vpop.eup %775  ;;  %v363_v51 = vmul.f32 %v774_v50, %v1062_v0  ;;  %v1234_v0 = vmul.f32 %v1078_v3, %v474_v53  ;;  %v494_v39 = vand.u32 2147483647, %v1100_v10  ;;  %vm1245_vm10 = vcmp.lt.f32.partialorder %v467_v36, 0.0004427343 }
  0x43   : > { %v778_v59 = vpop.eup %777  ;;  %v364_v61 = vmul.f32 %v776_v62, %v1072_v2  ;;  %v370_v47 = vsub.f32 2.0, %v362_v17  ;;  %v485_v2 = vand.u32 2147483647, %v1087_v5  ;;  %v492_v16 = vadd.f32 1.0, %v491_v8 }
  0x44   : > { %v780_v63 = vpop.eup %779  ;;  %v365_v42 = vmul.f32 %v778_v59, %v1081_v4  ;;  %v371_v43 = vsub.f32 2.0, %v363_v51  ;;  %vm1250_vm11 = vcmp.lt.f32.partialorder %v476_v37, 0.0004427343  ;;  %v1255_v12 = vmul.f32 %v1087_v5, %v483_v38 }
  0x45   : > { %v782_v57 = vpop.eup %781  ;;  %v366_v1 = vmul.f32 %v780_v63, %v1090_v6  ;;  %v372_v3 = vsub.f32 2.0, %v364_v61  ;;  %v503_v6 = vand.u32 2147483647, %v1116_v14  ;;  %801 = vlog2.f32 %v1133_v19 }
  0x46   : > { %v784_v4 = vpop.eup %783  ;;  %v367_v30 = vmul.f32 %v782_v57, %v1103_v11  ;;  %v373_v17 = vsub.f32 2.0, %v365_v42  ;;  %1471 = vst [vmem:[#allocation22_spill] sm:$0xff] %v1255_v12  ;;  %v501_v8 = vadd.f32 1.0, %v500_v34  ;;  %v378_v37 = vmul.f32 %v772_v7, %v370_v47 }
  0x47   : > { %v786_v51 = vpop.eup %785  ;;  %v368_v61 = vmul.f32 %v784_v4, %v1119_v15  ;;  %v374_v36 = vsub.f32 2.0, %v366_v1  ;;  %v611_v27 = vadd.f32 %v1150_v32, %v982_v23  ;;  %v379_v38 = vmul.f32 %v774_v50, %v371_v43 }
  0x48   : > { %v788_v9 = vpop.eup %787  ;;  %v369_v11 = vmul.f32 %v786_v51, %v1133_v19  ;;  %v375_v42 = vsub.f32 2.0, %v367_v30  ;;  %v380_v12 = vmul.f32 %v776_v62, %v372_v3  ;;  %v381_v15 = vmul.f32 %v778_v59, %v373_v17  ;;  %v1480_v3 = vld [vmem:[#allocation4_spill] sm:$0xff] }
  0x49   : > { %v790_v26 = vpop.eup %789  ;;  %v376_v5 = vsub.f32 2.0, %v368_v61  ;;  %v436_v25 = vmul.f32 0.6931472, %v788_v9  ;;  %v382_v1 = vmul.f32 %v780_v63, %v374_v36  ;;  %vm521_vm12 = vcmp.gt.f32.partialorder %v1007_v28, 0.5  ;;  %v1482_v61 = vld [vmem:[#allocation6_spill] sm:$0xff] }
  0x4a   : > { %v792_v22 = vpop.eup %791  ;;  %v377_v21 = vsub.f32 2.0, %v369_v11  ;;  %v445_v56 = vmul.f32 0.6931472, %v790_v26  ;;  %v383_v55 = vmul.f32 %v782_v57, %v375_v42  ;;  %v1265_v7 = vmul.f32 %v1100_v10, %v492_v16  ;;  %v1484_v42 = vld [vmem:[#allocation8_spill] sm:$0xff]  ;;  %v1489_v9 = vld [vmem:[#allocation18_spill] sm:$0xff] }
  0x4b   : > { %v794_v34 = vpop.eup %793  ;;  %v384_v19 = vmul.f32 %v784_v4, %v376_v5  ;;  %v454_v30 = vmul.f32 0.6931472, %v792_v22  ;;  %v1268_v50 = vmul.f32 %v1156_v33, %v378_v37  ;;  %vm1270_vm0 = vcmp.lt.f32.partialorder %v485_v2, 0.0004427343  ;;  %v1479_v2 = vld [vmem:[#allocation10_spill] sm:$0xff]  ;;  %v1481_v4 = vld [vmem:[#allocation5_spill] sm:$0xff] }
  0x4c   : > { %v796_v32 = vpop.eup %795  ;;  %v385_v47 = vmul.f32 %v786_v51, %v377_v21  ;;  %v463_v62 = vmul.f32 0.6931472, %v794_v34  ;;  %v1275_v26 = vmul.f32 %v1116_v14, %v501_v8  ;;  %v1278_v57 = vmul.f32 %v1163_v35, %v379_v38  ;;  %v1483_v8 = vld [vmem:[#allocation7_spill] sm:$0xff] }
  0x4d   : > { %v798_v59 = vpop.eup %797  ;;  %v1281_v22 = vmul.f32 %v1171_v44, %v380_v12  ;;  %v442_v21 = vsel %vm1217_vm7, %v1186_v41, %v436_v25  ;;  %v472_v10 = vmul.f32 0.6931472, %v796_v32  ;;  %v1287_v16 = vmul.f32 %v1178_v45, %v381_v15 }
  0x4e   : > { %v1290_v33 = vmul.f32 %v1183_v40, %v382_v1  ;;  %v451_v14 = vsel %vm1226_vm8, %v1208_v20, %v445_v56  ;;  %v1296_v35 = vadd.f32 %v611_v27, %v987_v24  ;;  %v800_v12 = vpop.eup %799  ;;  %v1299_v44 = vmul.f32 %v1192_v46, %v383_v55  ;;  %v1478_v20 = vld [vmem:[#allocation9_spill] sm:$0xff] }
  0x4f   : > { %v1302_v25 = vmul.f32 %v1199_v48, %v384_v19  ;;  %v1305_v31 = vmul.f32 %v1205_v49, %v385_v47  ;;  %v460_v45 = vsel %vm1238_vm9, %v1222_v58, %v454_v30  ;;  %v469_v56 = vsel %vm1245_vm10, %v1231_v18, %v463_v62  ;;  %v1485_v19 = vld [vmem:[#allocation22_spill] sm:$0xff] }
  0x50   : > { %v481_v27 = vmul.f32 0.6931472, %v798_v59  ;;  %vm1313_vm3 = vcmp.lt.f32.partialorder %v494_v39, 0.0004427343  ;;  %v506_v55 = vadd.f32 %v442_v21, %v1034_v52  ;;  %v522_v40 = vsub.f32 1.0, %v1268_v50 }
  0x51   : > { %v478_v41 = vsel %vm1250_vm11, %v1234_v0, %v472_v10  ;;  %v507_v60 = vadd.f32 %v451_v14, %v1039_v54  ;;  %v523_v46 = vsub.f32 1.0, %v1278_v57  ;;  %v524_v48 = vsub.f32 1.0, %v1281_v22 }
  0x52   : > { %v490_v18 = vmul.f32 0.6931472, %v800_v12  ;;  %vm1325_vm6 = vcmp.lt.f32.partialorder %v503_v6, 0.0004427343  ;;  %v508_v58 = vadd.f32 %v460_v45, %v1478_v20  ;;  %v525_v52 = vsub.f32 1.0, %v1287_v16  ;;  %v802_v43 = vpop.eup %801  ;;  %v1487_v20 = vld [vmem:[#allocation16_spill] sm:$0xff] }
  0x53   : > { %v526_v63 = vsub.f32 1.0, %v1290_v33  ;;  %v509_v13 = vadd.f32 %v469_v56, %v1479_v2  ;;  %v527_v0 = vsub.f32 1.0, %v1299_v44  ;;  %v528_v54 = vsub.f32 1.0, %v1302_v25 }
  0x54   : > { %v529_v39 = vsub.f32 1.0, %v1305_v31  ;;  %v530_v53 = vsel %vm514_vm13, %v1268_v50, %v522_v40  ;;  %v531_v17 = vsel %vm515_vm14, %v1278_v57, %v523_v46  ;;  %v532_v6 = vsel %vm516_vm15, %v1281_v22, %v524_v48  ;;  %v1486_v46 = vld [vmem:[#allocation15_spill] sm:$0xff] }
  0x55   : > { %v533_v51 = vsel %vm517_vm1, %v1287_v16, %v525_v52  ;;  %v534_v36 = vsel %vm518_vm2, %v1290_v33, %v526_v63  ;;  %v535_v11 = vsel %vm519_vm4, %v1299_v44, %v527_v0  ;;  %v536_v37 = vsel %vm520_vm5, %v1302_v25, %v528_v54  ;;  %v1488_v63 = vld [vmem:[#allocation17_spill] sm:$0xff]  ;;  %v1490_v54 = vld [vmem:[#allocation11_spill] sm:$0xff] }
  0x56   : > { %v537_v5 = vsel %vm521_vm12, %v1305_v31, %v529_v39  ;;  %v538_v38 = vsub.f32 1.0, %v530_v53  ;;  %v539_v15 = vsub.f32 1.0, %v531_v17  ;;  %v540_v1 = vsub.f32 1.0, %v532_v6  ;;  %v1491_v53 = vld [vmem:[#allocation12_spill] sm:$0xff]  ;;  %v1492_v6 = vld [vmem:[#allocation19_spill] sm:$0xff] }
  0x57   : > { %v541_v34 = vsub.f32 1.0, %v533_v51  ;;  %v487_v30 = vsel %vm1270_vm0, %v1485_v19, %v481_v27  ;;  %v542_v32 = vsub.f32 1.0, %v534_v36  ;;  %v543_v47 = vsub.f32 1.0, %v535_v11 }
  0x58   : > { %v544_v62 = vsub.f32 1.0, %v536_v37  ;;  %v554_v59 = vmul.f32 %v538_v38, %v538_v38  ;;  %v555_v21 = vmul.f32 %v539_v15, %v539_v15  ;;  %v556_v10 = vmul.f32 %v540_v1, %v540_v1 }
  0x59   : > { %v557_v14 = vmul.f32 %v541_v34, %v541_v34  ;;  %v499_v12 = vmul.f32 0.6931472, %v802_v43  ;;  %v545_v45 = vsub.f32 1.0, %v537_v5  ;;  %v558_v56 = vmul.f32 %v542_v32, %v542_v32 }
  0x5a   : > { %v559_v40 = vmul.f32 %v543_v47, %v543_v47  ;;  %v562_v48 = vmul.f32 %v554_v59, %v1486_v46  ;;  %v563_v52 = vmul.f32 %v555_v21, %v1487_v20  ;;  %v564_v2 = vmul.f32 %v556_v10, %v1488_v63 }
  0x5b   : > { %v565_v27 = vmul.f32 %v557_v14, %v1489_v9  ;;  %v496_v0 = vsel %vm1313_vm3, %v1265_v7, %v490_v18  ;;  %v510_v39 = vadd.f32 %v478_v41, %v1490_v54  ;;  %v511_v43 = vadd.f32 %v487_v30, %v1491_v53 }
  0x5c   : > { %v560_v17 = vmul.f32 %v544_v62, %v544_v62  ;;  %v566_v51 = vmul.f32 %v558_v56, %v1492_v6  ;;  %v570_v36 = vmul.f32 %v562_v48, %v506_v55  ;;  %v571_v11 = vmul.f32 %v563_v52, %v507_v60 }
  0x5d   : > { %v572_v37 = vmul.f32 %v564_v2, %v508_v58  ;;  %v505_v5 = vsel %vm1325_vm6, %v1275_v26, %v499_v12  ;;  %v561_v38 = vmul.f32 %v545_v45, %v545_v45  ;;  %v567_v7 = vmul.f32 %v559_v40, %v1493_v29  ;;  %v1494_v58 = vld [vmem:[#allocation13_spill] sm:$0xff] }
  0x5e   : > { %v573_v18 = vmul.f32 %v565_v27, %v509_v13  ;;  %v578_v41 = vadd.f32 %v571_v11, %v570_v36  ;;  %v586_v15 = vadd.f32 %v1278_v57, %v1268_v50  ;;  %v594_v55 = vmul.f32 %v1268_v50, %v1480_v3  ;;  %v1496_v13 = vld [vmem:[#allocation21_spill] sm:$0xff]  ;;  %v1497_v50 = vld [vmem:[#allocation14_spill] sm:$0xff] }
  0x5f   : > { %v595_v60 = vmul.f32 %v1278_v57, %v1481_v4  ;;  %v512_v1 = vadd.f32 %v496_v0, %v1494_v58  ;;  %v1495_v49 = vmov 0.8   ;;  %v596_v34 = vmul.f32 %v1281_v22, %v982_v23 }
  0x60   : > { %v553_v26 = vsel %vm521_vm12, 8.0, %v1495_v49  ;;  %v568_v19 = vmul.f32 %v560_v17, %v1496_v13  ;;  %v574_v30 = vmul.f32 %v566_v51, %v510_v39  ;;  %v579_v32 = vadd.f32 %v578_v41, %v572_v37 }
  0x61   : > { %v587_v47 = vadd.f32 %v586_v15, %v1281_v22  ;;  %v513_v3 = vadd.f32 %v505_v5, %v1497_v50  ;;  %v597_v57 = vmul.f32 %v1287_v16, %v987_v24  ;;  %v602_v4 = vadd.f32 %v595_v60, %v594_v55 }
  0x62   : > { %v613_v62 = vadd.f32 %v1296_v35, %v1482_v61  ;;  %v569_v59 = vmul.f32 %v561_v38, %v553_v26  ;;  %v575_v21 = vmul.f32 %v567_v7, %v511_v43  ;;  %v580_v23 = vadd.f32 %v579_v32, %v573_v18 }
  0x63   : > { %v588_v10 = vadd.f32 %v587_v47, %v1287_v16  ;;  %v598_v14 = vmul.f32 %v1290_v33, %v1482_v61  ;;  %v603_v22 = vadd.f32 %v602_v4, %v596_v34  ;;  %v576_v45 = vmul.f32 %v568_v19, %v512_v1 }
  0x64   : > { %v614_v12 = vadd.f32 %v613_v62, %v1483_v8  ;;  %v581_v56 = vadd.f32 %v580_v23, %v574_v30  ;;  %v599_v24 = vmul.f32 %v1299_v44, %v1483_v8  ;;  %v577_v48 = vmul.f32 %v569_v59, %v513_v3 }
  0x65   : > { %v589_v40 = vadd.f32 %v588_v10, %v1290_v33  ;;  %v604_v35 = vadd.f32 %v603_v22, %v597_v57  ;;  %v600_v61 = vmul.f32 %v1302_v25, %v1484_v42  ;;  %v601_v2 = vmul.f32 %v1305_v31, %v1007_v28 }
  0x66   : > { %v615_v46 = vadd.f32 %v614_v12, %v1484_v42  ;;  %v582_v20 = vadd.f32 %v581_v56, %v575_v21 }
  0x67   : > { %v590_v16 = vadd.f32 %v589_v40, %v1299_v44  ;;  %v605_v52 = vadd.f32 %v604_v35, %v598_v14 }
  0x68   : > { %v616_v63 = vadd.f32 %v615_v46, %v1007_v28  ;;  %v583_v33 = vadd.f32 %v582_v20, %v576_v45 }
  0x69   : > { %v591_v8 = vadd.f32 %v590_v16, %v1302_v25  ;;  %v606_v9 = vadd.f32 %v605_v52, %v599_v24 }
  0x6a   : > { %v584_v27 = vadd.f32 %v583_v33, %v577_v48  ;;  %725 = vst [vmem:[%s223_s4 + $0x18] sm:$0xff] %v616_v63 }
  0x6b   : > { %v592_v44 = vadd.f32 %v591_v8, %v1305_v31  ;;  %v607_v0 = vadd.f32 %v606_v9, %v600_v61 }
  0x6c   : > { %620 = vst [vmem:[%s223_s4] sm:$0xff] %v584_v27 }
  0x6d   : > { %v608_v42 = vadd.f32 %v607_v0, %v601_v2  ;;  %721 = vst [vmem:[%s223_s4 + $0x8] sm:$0xff] %v592_v44 }
  0x6f   : > { %723 = vst [vmem:[%s223_s4 + $0x10] sm:$0xff] %v608_v42 }
  0x70 PF: > { %s14_s16 = sadd.s32 1, %s825_s16   ;;  %s1498_s14 = smov %s821_s15 }
  0x71   : > { %p11_p7 = scmp.ge.s32.totalorder %s14_s16, 4   ;;  %s1499_s15 = smov %s1501_s0 }
  0x73   :  { %13 = sbr.rel (!%p11_p7) target bundleno = 2 (0x2), region = 68 }

</bundles_post_ra>
